<compile_context>
chip_gen: v6e
topology: v6e:2x2x1
jax: 0.10.0
libtpu: 0.0.40
codegen_flags: <defaults>
</compile_context>

<pallas_src>
import functools

import jax
import jax.numpy as jnp
from jax import lax
from jax.experimental import pallas as pl
from jax.experimental.pallas import tpu as pltpu

NEG_SLOPE = 0.2  # DGL GATConv default negative_slope


def _pick_tile(n, target):
    """Largest tile <= target that divides n and is a multiple of 8 (or n)."""
    if n <= target:
        return n
    for t in range(target, 7, -1):
        if n % t == 0 and t % 8 == 0:
            return t
    return n  # TODO(synk): pad N upstream instead of falling back to one block.


# ---------------------------------------------------------------------------
# Stage 1: per-metapath projection  feat[m] = h @ W_fused[m]   (bf16, f32 acc)
# ---------------------------------------------------------------------------
def _proj_kernel(h_ref, w_ref, feat_ref):
    feat_ref[0] = jnp.dot(h_ref[...], w_ref[0],
                          preferred_element_type=jnp.float32
                          ).astype(feat_ref.dtype)


def project_features(h_bf16, w_fused_bf16, tile_rows=None):
    n, f_in = h_bf16.shape
    m, _, hd = w_fused_bf16.shape
    tile_rows = tile_rows or _pick_tile(n, 256)
    return pl.pallas_call(
        _proj_kernel,
        out_shape=jax.ShapeDtypeStruct((m, n, hd), jnp.bfloat16),
        grid=(m, n // tile_rows),
        in_specs=[
            pl.BlockSpec((tile_rows, f_in), lambda i, t: (t, 0)),
            pl.BlockSpec((1, f_in, hd), lambda i, t: (i, 0, 0)),
        ],
        out_specs=pl.BlockSpec((1, tile_rows, hd), lambda i, t: (i, t, 0)),
        compiler_params=pltpu.CompilerParams(
            dimension_semantics=("parallel", "parallel")),
    )(h_bf16, w_fused_bf16)


# ---------------------------------------------------------------------------
# Stage 2: GATConv per metapath. grid = (metapath, dst_tile), both parallel.
# ---------------------------------------------------------------------------
def _gat_kernel(feat_src_ref, feat_dst_ref, adj_ref, albd_ref, aux_ref,
                z_ref, *, num_heads):
    hd = feat_src_ref.shape[2]
    d = hd // num_heads

    feat = feat_src_ref[0]                      # (N, HD) bf16, resident per metapath
    feat_dst = feat_dst_ref[0]                  # (T, HD) bf16 (this dst tile)
    feat_dst_f32 = feat_dst.astype(jnp.float32)

    # Mask handling hoisted out of the head loop: one select + one row reduce.
    mask = adj_ref[0] > 0                       # (T, N)
    mask_bias = jnp.where(mask, 0.0, -1e30).astype(jnp.float32)
    has_edge = (jnp.max(mask_bias, axis=-1, keepdims=True) == 0.0
                ).astype(jnp.float32)           # (T, 1); 0 for zero-in-degree rows

    # All-head src scores in one MXU push: block-diag attn_l (H, HD) x feat^T.
    el_all = lax.dot_general(albd_ref[0], feat, (((1,), (1,)), ((), ())),
                             preferred_element_type=jnp.float32)    # (H, N)

    aux = aux_ref[0]                            # (2, HD) f32: [attn_r; bias]

    head_out = []
    for hh in range(num_heads):                 # heads are few & static
        sl = slice(hh * d, (hh + 1) * d)
        feat_h = feat[:, sl]                    # (N, D) bf16
        ar = aux[0:1, sl]                       # (1, D)
        bias = aux[1:2, sl]                     # (1, D)

        el = el_all[hh:hh + 1, :]                                        # (1, N)
        er = jnp.sum(feat_dst_f32[:, sl] * ar, axis=-1, keepdims=True)   # (T, 1)

        # e[dst, src] = leaky_relu(el[src] + er[dst]) + mask_bias
        e = er + el                                                      # (T, N)
        e = jnp.maximum(e, NEG_SLOPE * e)                                # leaky_relu
        e = e + mask_bias
        mrow = jnp.max(e, axis=-1, keepdims=True)
        p = jnp.exp(e - mrow)                   # masked entries underflow to 0
        denom = jnp.sum(p, axis=-1, keepdims=True)                       # (T, 1)

        # Normalize AFTER aggregation (N divides, not N*N); bf16 MXU, f32 acc.
        agg = jnp.dot(p.astype(jnp.bfloat16), feat_h,
                      preferred_element_type=jnp.float32)                # (T, D)
        inv = pl.reciprocal(jnp.maximum(denom, 1e-9), approx=True) * has_edge
        rst = agg * inv + bias
        rst = jnp.where(rst > 0, rst, jnp.exp(jnp.minimum(rst, 0.0)) - 1.0)  # ELU
        head_out.append(rst)

    z_ref[0] = jnp.concatenate(head_out, axis=-1).astype(z_ref.dtype)


def gat_forward(feat, adj_i8, albd, aux, num_heads, tile_dst=None):
    m, n, hd = feat.shape
    tile_dst = tile_dst or _pick_tile(n, 256)
    n_tiles = n // tile_dst
    kernel = functools.partial(_gat_kernel, num_heads=num_heads)

    # Explicit scoped-VMEM budget (v7x: 64 MiB physical; v5e default scoped 16 MiB).
    est = (2 * n * hd * 2            # resident feat (bf16, double-buffered)
           + 2 * tile_dst * hd * 2   # dst-tile feat
           + 2 * tile_dst * n        # int8 adjacency tile
           + 2 * tile_dst * hd * 2   # z output tile (bf16)
           + 8 * tile_dst * n * 4    # f32 (T, N) temporaries (mask_bias / e / p)
           + (2 << 20))
    vmem_limit = int(min(max(est, 32 << 20), 64 << 20))

    return pl.pallas_call(
        kernel,
        out_shape=jax.ShapeDtypeStruct((m, n, hd), jnp.bfloat16),
        grid=(m, n_tiles),
        in_specs=[
            pl.BlockSpec((1, n, hd), lambda i, t: (i, 0, 0)),         # feat (src side)
            pl.BlockSpec((1, tile_dst, hd), lambda i, t: (i, t, 0)),  # feat (dst tile)
            pl.BlockSpec((1, tile_dst, n), lambda i, t: (i, t, 0)),   # adjacency
            pl.BlockSpec((1, num_heads, hd), lambda i, t: (i, 0, 0)), # block-diag attn_l
            pl.BlockSpec((1, 2, hd), lambda i, t: (i, 0, 0)),         # attn_r + bias
        ],
        out_specs=pl.BlockSpec((1, tile_dst, hd), lambda i, t: (i, t, 0)),
        compiler_params=pltpu.CompilerParams(
            dimension_semantics=("parallel", "parallel"),
            vmem_limit_bytes=vmem_limit),
    )(feat, feat, adj_i8, albd, aux)


# ---------------------------------------------------------------------------
# Stage 3: semantic attention scores -> beta (M, 1). Streams bf16 z once.
# ---------------------------------------------------------------------------
def _sem_score_kernel(z_ref, w1_ref, b1_ref, w2_ref, beta_ref, acc_ref, *,
                      n_total):
    t = pl.program_id(0)

    @pl.when(t == 0)
    def _():
        acc_ref[...] = jnp.zeros_like(acc_ref)

    m, tile_n, hd = z_ref.shape
    # One fused (M*T, HD) @ (HD, Hs) bf16 matmul for all metapaths in this tile.
    z = z_ref[...].reshape(m * tile_n, hd)
    proj = jnp.tanh(jnp.dot(z, w1_ref[...],
                            preferred_element_type=jnp.float32) + b1_ref[...])
    # (Hs, 1) matmul replaced by VPU multiply + lane reduce (w2 passed as (1, Hs)).
    s = jnp.sum(proj * w2_ref[...], axis=-1, keepdims=True)      # (M*T, 1)
    acc_ref[...] += jnp.sum(s.reshape(m, tile_n, 1), axis=1)     # (M, 1)

    @pl.when(t == pl.num_programs(0) - 1)
    def _():
        w = acc_ref[...] * (1.0 / n_total)                       # mean over nodes
        w = w - jnp.max(w, axis=0, keepdims=True)
        ew = jnp.exp(w)
        beta_ref[...] = ew / jnp.sum(ew, axis=0, keepdims=True)


def semantic_scores(z, sem_w1_bf16, sem_b1, sem_w2t, tile_n=None):
    m, n, hd = z.shape
    hs = sem_w1_bf16.shape[1]
    tile_n = tile_n or _pick_tile(n, 1024)
    kernel = functools.partial(_sem_score_kernel, n_total=float(n))
    return pl.pallas_call(
        kernel,
        out_shape=jax.ShapeDtypeStruct((m, 1), jnp.float32),
        grid=(n // tile_n,),
        in_specs=[
            pl.BlockSpec((m, tile_n, hd), lambda t: (0, t, 0)),
            pl.BlockSpec((hd, hs), lambda t: (0, 0)),
            pl.BlockSpec((1, hs), lambda t: (0, 0)),
            pl.BlockSpec((1, hs), lambda t: (0, 0)),
        ],
        out_specs=pl.BlockSpec((m, 1), lambda t: (0, 0)),
        scratch_shapes=[pltpu.VMEM((m, 1), jnp.float32)],
        compiler_params=pltpu.CompilerParams(
            dimension_semantics=("arbitrary",)),
    )(z, sem_w1_bf16, sem_b1, sem_w2t)


# ---------------------------------------------------------------------------
# Stage 4: beta-weighted combine over metapaths, lane-dense streamed tiles.
# ---------------------------------------------------------------------------
def _sem_combine_kernel(beta_ref, z_ref, out_ref):
    m = z_ref.shape[0]
    acc = beta_ref[0] * z_ref[0].astype(jnp.float32)
    for mp in range(1, m):                                  # M small & static
        acc = acc + beta_ref[mp] * z_ref[mp].astype(jnp.float32)
    out_ref[...] = acc.astype(out_ref.dtype)


def semantic_combine(beta_vec, z_slab, tile_rows=None):
    m, rows, cols = z_slab.shape
    tile_rows = tile_rows or _pick_tile(rows, 2048)
    return pl.pallas_call(
        _sem_combine_kernel,
        out_shape=jax.ShapeDtypeStruct((rows, cols), jnp.float32),
        grid=(rows // tile_rows,),
        in_specs=[
            pl.BlockSpec(memory_space=pltpu.MemorySpace.SMEM),      # beta (M,)
            pl.BlockSpec((m, tile_rows, cols), lambda t: (0, t, 0)),
        ],
        out_specs=pl.BlockSpec((tile_rows, cols), lambda t: (t, 0)),
        compiler_params=pltpu.CompilerParams(
            dimension_semantics=("parallel",)),
    )(beta_vec, z_slab)


# ---------------------------------------------------------------------------
# HANLayer forward
# ---------------------------------------------------------------------------
def han_layer_forward(h, adj, params):
    m, n_heads, f_in, d = params["W"].shape
    hd = n_heads * d
    n = h.shape[0]

    # One-time parameter re-layouts (head fusion, block-diag attn_l, merged aux).
    w_fused = jnp.transpose(params["W"], (0, 2, 1, 3)).reshape(m, f_in, hd)
    w_fused = w_fused.astype(jnp.bfloat16)
    attn_l = params["attn_l"][:, :, 0, :]                              # (M, H, D)
    albd = (attn_l[:, :, None, :] *
            jnp.eye(n_heads, dtype=jnp.float32)[None, :, :, None]
            ).reshape(m, n_heads, hd).astype(jnp.bfloat16)             # (M, H, HD)
    aux = jnp.stack([params["attn_r"].reshape(m, hd),
                     params["gat_bias"].reshape(m, hd)], axis=1)       # (M, 2, HD)
    adj_i8 = adj.astype(jnp.int8)

    # Stage 1: hoisted projection (bf16), once per metapath.
    feat = project_features(h.astype(jnp.bfloat16), w_fused)           # (M, N, HD)

    # Stage 2: GATConv per metapath.
    z = gat_forward(feat, adj_i8, albd, aux, n_heads)                  # (M, N, HD) bf16

    # Stage 3: semantic attention scores + softmax over metapaths.
    beta = semantic_scores(z, params["sem_w1"].astype(jnp.bfloat16),
                           params["sem_b1"], params["sem_w2"].T)       # (M, 1)

    # Stage 4: beta-weighted combine (lane-dense slab view of z when divisible).
    if (n * hd) % 128 == 0:
        rows, cols = (n * hd) // 128, 128
    else:
        rows, cols = n, hd
    out = semantic_combine(beta[:, 0], z.reshape(m, rows, cols))
    return out.reshape(n, hd)                                          # (N, HD) f32


# ---------------------------------------------------------------------------
# Pure-JAX reference (same eval-mode math, f32) for verification.
# ---------------------------------------------------------------------------
def reference_forward(h, adj, p):
    m_paths, n_heads, f_in, d = p["W"].shape
    embs = []
    for i in range(m_paths):
        heads = []
        for hh in range(n_heads):
            feat = h @ p["W"][i, hh]
            el = (feat * p["attn_l"][i, hh]).sum(-1, keepdims=True)
            er = (feat * p["attn_r"][i, hh]).sum(-1, keepdims=True)
            e = er + el.T
            e = jnp.where(e > 0, e, NEG_SLOPE * e)
            mask = adj[i] > 0
            e = jnp.where(mask, e, jnp.finfo(jnp.float32).min)
            mx = jnp.max(e, axis=-1, keepdims=True)
            pr = jnp.where(mask, jnp.exp(e - mx), 0.0)
            alpha = pr / jnp.maximum(pr.sum(-1, keepdims=True), 1e-9)
            rst = alpha @ feat + p["gat_bias"][i, hh]
            rst = jnp.where(rst > 0, rst, jnp.exp(jnp.minimum(rst, 0.0)) - 1.0)
            heads.append(rst)
        embs.append(jnp.concatenate(heads, axis=-1))
    z = jnp.stack(embs, axis=1)                                   # (N, M, HD)
    s = jnp.tanh(z @ p["sem_w1"] + p["sem_b1"][0]) @ p["sem_w2"]  # (N, M, 1)
    w = s.mean(0)                                                 # (M, 1)
    beta = jax.nn.softmax(w, axis=0)
    return (beta[None] * z).sum(1)


def init_params(key, num_metapaths, in_size, out_size, num_heads,
                sem_hidden=128):
    ks = jax.random.split(key, 5)
    scale = 0.1
    return {
        "W": scale * jax.random.normal(
            ks[0], (num_metapaths, num_heads, in_size, out_size), jnp.float32),
        "attn_l": scale * jax.random.normal(
            ks[1], (num_metapaths, num_heads, 1, out_size), jnp.float32),
        "attn_r": scale * jax.random.normal(
            ks[2], (num_metapaths, num_heads, 1, out_size), jnp.float32),
        "gat_bias": jnp.zeros((num_metapaths, num_heads, 1, out_size),
                              jnp.float32),
        "sem_w1": scale * jax.random.normal(
            ks[3], (num_heads * out_size, sem_hidden), jnp.float32),
        "sem_b1": jnp.zeros((1, sem_hidden), jnp.float32),
        "sem_w2": scale * jax.random.normal(
            ks[4], (sem_hidden, 1), jnp.float32),
    }


if __name__ == "__main__":
    # Small shapes: 16 nodes, in_size=32, out_size=16, 2 heads, 2 metapaths.
    N, F_IN, D_OUT, HEADS, METAPATHS = 16, 32, 16, 2, 2

    key = jax.random.PRNGKey(0)
    k_h, k_adj, k_p = jax.random.split(key, 3)

    h = jax.random.normal(k_h, (N, F_IN), jnp.float32)
    # random metapath-reachable graphs (dense int8 adjacency, [metapath, dst, src])
    adj = (jax.random.uniform(k_adj, (METAPATHS, N, N)) < 0.3)
    adj = jnp.logical_or(adj, jnp.eye(N, dtype=bool)[None])      # self loops
    adj = adj.astype(jnp.int8)

    params = init_params(k_p, METAPATHS, F_IN, D_OUT, HEADS)

    out = han_layer_forward(h, adj, params)
    out = jax.block_until_ready(out)

    ref = reference_forward(h, adj, params)
    assert out.shape == (N, HEADS * D_OUT)
    # Tolerance reflects bf16 MXU operands / bf16 z storage (f32 accumulation)
    # and the approximate EUP reciprocal in the edge-softmax normalization.
    assert jnp.allclose(out, ref, atol=5e-2, rtol=5e-2), (
        float(jnp.max(jnp.abs(out - ref))))

    print("KERNEL_OK")
</pallas_src>

<mosaic_0001>
module attributes {stable_mosaic.version = 11 : i64} {
  func.func @_proj_kernel(%arg0: i32, %arg1: i32, %arg2: memref<16x32xbf16, #tpu.memory_space<vmem>>, %arg3: memref<1x32x32xbf16, #tpu.memory_space<vmem>>, %arg4: memref<1x16x32xbf16, #tpu.memory_space<vmem>>) attributes {dimension_semantics = [#tpu.dimension_semantics<parallel>, #tpu.dimension_semantics<parallel>], iteration_bounds = array<i64: 2, 1>, scalar_prefetch = 0 : i64, scratch_operands = 0 : i64, tpu.core_type = #tpu.core_type<tc>, window_params = [{transform_indices = @transform_0, window_bounds = array<i64: 16, 32>}, {transform_indices = @transform_1, window_bounds = array<i64: 1, 32, 32>}, {transform_indices = @transform_2, window_bounds = array<i64: 1, 16, 32>}]} {
    %c0 = arith.constant 0 : index
    %c0_0 = arith.constant 0 : index
    %0 = vector.load %arg2[%c0, %c0_0] : memref<16x32xbf16, #tpu.memory_space<vmem>>, vector<16x32xbf16>
    %c0_1 = arith.constant 0 : index
    %c0_2 = arith.constant 0 : index
    %c0_3 = arith.constant 0 : index
    %1 = vector.load %arg3[%c0_1, %c0_2, %c0_3] : memref<1x32x32xbf16, #tpu.memory_space<vmem>>, vector<1x32x32xbf16>
    %2 = vector.shape_cast %1 : vector<1x32x32xbf16> to vector<32x32xbf16>
    %cst = arith.constant dense<0.000000e+00> : vector<16x32xf32>
    %3 = tpu.matmul %0, %2, %cst {dimension_numbers = #tpu.dot_dimension_numbers<[1], [0], [0], [1], [0, 0, 1, 1], [], []>} : vector<16x32xbf16>, vector<32x32xbf16>, vector<16x32xf32> -> vector<16x32xf32>
    %4 = arith.truncf %3 : vector<16x32xf32> to vector<16x32xbf16>
    %c0_4 = arith.constant 0 : index
    %c0_5 = arith.constant 0 : index
    %c0_6 = arith.constant 0 : index
    %5 = vector.load %arg4[%c0_4, %c0_5, %c0_6] : memref<1x16x32xbf16, #tpu.memory_space<vmem>>, vector<1x16x32xbf16>
    %6 = vector.shape_cast %5 : vector<1x16x32xbf16> to vector<16x32xbf16>
    %7 = vector.shape_cast %4 : vector<16x32xbf16> to vector<1x16x32xbf16>
    tpu.vector_store %arg4[%c0_4, %c0_5, %c0_6], %7 {strides = array<i32>} : memref<1x16x32xbf16, #tpu.memory_space<vmem>>, vector<1x16x32xbf16>,
    return
  }
  func.func @transform_0(%arg0: i32, %arg1: i32) -> (i32, i32) {
    %c0_i32 = arith.constant 0 : i32
    %c0_i32_0 = arith.constant 0 : i32
    return %arg1, %c0_i32 : i32, i32
  }
  func.func @transform_1(%arg0: i32, %arg1: i32) -> (i32, i32, i32) {
    %c0_i32 = arith.constant 0 : i32
    %c0_i32_0 = arith.constant 0 : i32
    %c0_i32_1 = arith.constant 0 : i32
    return %arg0, %c0_i32, %c0_i32_0 : i32, i32, i32
  }
  func.func @transform_2(%arg0: i32, %arg1: i32) -> (i32, i32, i32) {
    %c0_i32 = arith.constant 0 : i32
    %c0_i32_0 = arith.constant 0 : i32
    return %arg0, %arg1, %c0_i32 : i32, i32, i32
  }
}

</mosaic_0001>

<bundles_post_ra>
// kernel: tpu_custom_call.1
= control target key start
LH: loop header
LB: loop body
LE: loop exit
PB: predicated region body
PF: predicated region fallthrough
CT: control target
= control target key end

     0   :  { %7 = vsyncpa [#allocation3], 0  ;;  %s867_s0 = inlined_call_operand.hbm [shape: bf16[16,32], index: 0, kind: input, shape index: {}]   ;;  %s868_s1 = inlined_call_operand.hbm [shape: bf16[2,32,32], index: 1, kind: input, shape index: {}]   ;;  %s869_s2 = inlined_call_operand.hbm [shape: bf16[2,16,32], index: 2, kind: output, shape index: {}]  }
   0x1   :  { %8 = vsyncpa [#allocation6], 0 }
   0x2   :  { %10 = vsyncpa [#allocation6 + $0x1], 0 }
   0x3   :  { %11 = vsyncpa [#allocation4], 0 }
   0x4   :  { %13 = vsyncpa [#allocation4 + $0x1], 0  ;;  %s679_s9 = smov 0   ;;  %s681_s10 = smov 0  }
   0x5   :  { %s683_s11 = smov 0   ;;  %s685_s12 = smov 0  }
   0x6   :  { %s687_s13 = smov 0   ;;  %s689_s14 = smov 0  }
   0x7 LB: > { %s395_s15 = sadd.s32 4294967295, %s653_s14   ;;  %s396_s16 = sadd.s32 4294967294, %s653_s14   ;;  %s653_s14 = sphi %s689_s14, %s19_s14   ;;  %s649_s13 = sphi %s687_s13, %s889_s13   ;;  %s645_s12 = sphi %s685_s12, %s888_s12   ;;  %s641_s11 = sphi %s683_s11, %s887_s11   ;;  %s637_s10 = sphi %s681_s10, %s886_s10   ;;  %s633_s9 = sphi %s679_s9, %s885_s9  }
   0x8   : > { %p77_p0 = scmp.ne.s32.totalorder %s637_s10, %s633_s9  ;;  %p713_p1 = scmp.eq.s32.totalorder %s395_s15, 0 }
   0x9   : > { %p717_p2 = scmp.eq.s32.totalorder %s395_s15, 1  ;;  %p109_p3 = scmp.eq.s32.totalorder %s396_s16, 1 }
   0xa   : > { %p723_p4 = por %p713_p1, %p77_p0  ;;  %p397_p5 = scmp.ge.s32.totalorder %s653_s14, 1 }
   0xb   : > { %p728_p6 = por %p109_p3, %p77_p0  ;;  %p116_p7 = scmp.lt.s32.totalorder %s653_s14, 3 }
   0xc   : > { %s874_s19 = scalar_select %p723_p4, 1, 0 }
   0xd   : > { %s875_s20 = scalar_select %p728_p6, 1, 0 }
   0xe   : > { %p733_p8 = pnand %p397_p5, %p116_p7  ;;  %s655_s22 = smov [#allocation2]  }
   0xf   : > { %s131_s23 = sshll.u32 %s655_s22, 4  ;;  %s31_s25 = sadd.s32 1, %s649_s13  ;;  %s132_s23 = int_to_ptr.vmem [resolvable:$true] %s131_s23 }
  0x10   : > { %p441_p9 = pneg %p733_p8  ;;  %s526_s26 = scalar_lea.vmem %s132_s23, 128 }
  0x11   : > { %p527_p13 = scmp.ne.s32.totalorder %s132_s23, %s526_s26  ;;  %p534_p5 = scmp.lt.s32.totalorder %s132_s23, %s132_s23 }
  0x12   : > { %p742_p11 = pnand %p441_p9, %p713_p1  ;;  %p535_p7 = scmp.lt.s32.totalorder %s526_s26, %s526_s26 }
  0x14   : > { %p517_p12 = pneg %p742_p11  ;;  %p536_p6 = por %p535_p7, %p534_p5 }
  0x16   : > { %p529_p0 = pnand %p527_p13, %p517_p12 }
  0x18   : > { %p530_p3 = pneg %p529_p0 }
  0x1a   : > { %p537_p4 = pnand %p536_p6, %p530_p3 }
  0x1c   : > { %540 = shalt.err (!%p537_p4)
}
  0x1d   : > { %s871_s27 = smov 64   ;;  %s657_s28 = smov 4  }
  0x1e   : > { %444 = dma.hbm_to_vmem [thread:$0]  (!%p742_p11), %s867_s0, 128, %s132_s23, [#allocation3], %s871_s27, %s871_s27, %s657_s28  }
  0x1f   : > { %p33_p4 = scmp.ge.s32.totalorder %s31_s25, 2  ;;  %s64_s3 = sadd.s32 1, %s641_s11 }
  0x20   : > { %p71_p6 = scmp.ne.s32.totalorder %s641_s11, %s637_s10  ;;  %p72_p9 = scmp.eq.s32.totalorder %s653_s14, 0 }
  0x21   : > { %s891_s25 = smov (%p33_p4, %s31_s25), 0  ;;  %p454_p0 = scmp.lt.s32.totalorder %s653_s14, 2 }
  0x22   : > { %p763_p12 = por %p72_p9, %p71_p6  ;;  %p769_p13 = por %p717_p2, %p71_p6 }
  0x23   : > { %s61_s6 = ssub.s32 %s649_s13, %s891_s25  ;;  %s145_s7 = sand.u32 1, %s641_s11  }
  0x24   : > { %p62_p11 = scmp.eq.s32.totalorder %s61_s6, 0  ;;  %s400_s8 = sshll.u32 %s145_s7, 4 }
  0x25   : > { %s418_s16 = sshll.u32 %s649_s13, 8  ;;  %s149_s26 = scalar_lea.vmem [#allocation5], %s400_s8 }
  0x26   : > { %s778_s15 = scalar_select %p62_p11, %s641_s11, %s64_s3  }
  0x27   : > { %s155_s24 = scalar_lea.hbm %s868_s1, %s418_s16  ;;  %s156_s29 = sshll.u32 %s149_s26, 4  ;;  %s157_s29 = int_to_ptr.vmem [resolvable:$true] %s156_s29 }
  0x28   : > { %p786_p2 = pnand %p454_p0, %p763_p12  ;;  %s146_s30 = scalar_lea.sflag [#allocation6], %s145_s7 }
  0x29   : > { %s554_s6 = scalar_lea.vmem %s157_s29, 256  ;;  %s658_s3 = smov [#allocation5]  }
  0x2a   : > { %p543_p3 = pneg %p786_p2  ;;  %p555_p5 = scmp.ne.s32.totalorder %s157_s29, %s554_s6 }
  0x2b   : > { %s559_s27 = sshll.u32 %s658_s3, 4  ;;  %s560_s27 = int_to_ptr.vmem [resolvable:$false] %s559_s27 }
  0x2c   : > { %p557_p7 = pnand %p555_p5, %p543_p3  ;;  %s561_s16 = scalar_lea.vmem %s560_s27, 512 }
  0x2d   : > { %p562_p6 = scmp.lt.s32.totalorder %s157_s29, %s560_s27  ;;  %p563_p9 = scmp.lt.s32.totalorder %s561_s16, %s554_s6 }
  0x2e   : > { %p558_p4 = pneg %p557_p7 }
  0x2f   : > { %p564_p11 = por %p563_p9, %p562_p6 }
  0x31   : > { %p565_p10 = pnand %p564_p11, %p558_p4 }
  0x33   : > { %568 = shalt.err (!%p565_p10)
}
  0x34   : > { %s881_s4 = smov 64   ;;  %168 = sbr.rel (%p733_p8) target bundleno = 284 (0x11c), region = 28 }
  0x35   : > { %448 = dma.hbm_to_vmem [thread:$0]  (!%p786_p2), %s155_s24, 256, %s157_s29, %s146_s30, %s881_s4, %s881_s4, %s657_s28  }
  0x39   : > { %620 = dma.done.wait (%p713_p1), [#allocation3], 128  }
  0x3a   : > { %622 = vsyncadd (%p713_p1), [#allocation3], 4294967168  ;;  %s804_s27 = sand.u32 1, %s637_s10   ;;  %p882_p10 = scmp.ne.s32.totalorder %s874_s19, 0 }
  0x3b   : > { %s405_s7 = sshll.u32 %s804_s27, 4  ;;  %s175_s8 = scalar_lea.sflag [#allocation6], %s804_s27 }
  0x3c   : > { %s178_s22 = scalar_lea.vmem [#allocation5], %s405_s7 }
  0x3d   : > { %624 = dma.done.wait (%p882_p10), %s175_s8, 256  }
  0x3e   : > { %626 = vsyncadd (%p882_p10), %s175_s8, 4294967040  ;;  %v659_v0 = vmov 0.0   ;;  %vm660_vm0 = vmmov 0   ;;  %v512_v1 = vld [vmem:[%s178_s22 + $0x8] sm:$0xff]   ;;  %v513_v2 = vld [vmem:[%s178_s22] sm:$0xff]   ;;  %vm225_vm1 = vcmask 261120  }
  0x3f   : > { %425 = vmatprep.subr.bf16.mxu0 %v659_v0  ;;  %429 = vmatprep.mubr.msk.bf16.mxu0 %vm660_vm0, %v659_v0  ;;  %v514_v3 = vld [vmem:[#allocation2] sm:$0xff]   ;;  %s406_s17 = sshll.u32 %s804_s27, 3  ;;  %vm278_vm2 = vcmask 257024   ;;  %s421_s28 = sshll.u32 %s645_s12, 7 }
  0x40   : > { %426 = vmatpush3.bf16.msra.mxu0 %v512_v1  ;;  %s198_s19 = scalar_lea.vmem [#allocation7], %s406_s17  ;;  %s819_s26 = scalar_lea.hbm %s869_s2, %s421_s28 }
  0x41   : > { %427 = vmatprep.subr.bf16.mxu0 %v659_v0  ;;  %s297_s21 = sshll.u32 %s198_s19, 4  ;;  %s282_s29 = scalar_lea.sflag [#allocation4], %s804_s27  ;;  %s814_s21 = int_to_ptr.vmem [resolvable:$true] %s297_s21 }
  0x42   : > { %s569_s18 = scalar_lea.vmem %s814_s21, 128  ;;  %s661_s12 = smov [#allocation7]  }
  0x43   : > { %p570_p1 = scmp.ne.s32.totalorder %s814_s21, %s569_s18  ;;  %s573_s30 = sshll.u32 %s661_s12, 4  ;;  %s574_s30 = int_to_ptr.vmem [resolvable:$false] %s573_s30 }
  0x44   : > { %428 = vmatpush3.bf16.msra.mxu0 %v513_v2  ;;  %s575_s6 = scalar_lea.vmem %s574_s30, 256  ;;  %p576_p0 = scmp.lt.s32.totalorder %s814_s21, %s574_s30 }
  0x45   : > { %p571_p8 = pnand %p570_p1, %p769_p13  ;;  %p577_p2 = scmp.lt.s32.totalorder %s575_s6, %s569_s18 }
  0x47   : > { %430 = vmatmul.mubr.msk.bf16.vlgmr.msra.gmra.mxu0 %vm225_vm1, %v514_v3  ;;  %p572_p12 = pneg %p571_p8  ;;  %p578_p3 = por %p577_p2, %p576_p0 }
  0x49   : > { %p579_p5 = pnand %p578_p3, %p572_p12 }
 0x107   : > { %v263_v4 = vpop.f32.mrf.mxu0 }
 0x108   : > { %v419_v5 = vpack.c.bf16 %v263_v4, %v263_v4 }
 0x109   : > { %v431_v6 = vpop.f32.mrf.mxu0 }
 0x10a   : > { %279 = vst.msk [vmem:[%s198_s19] sm:$0xf] %vm278_vm2, %v419_v5 }
 0x10b   : > { %v266_v7 = vpop.f32.mrf.mxu0 }
 0x10c   : > { %v420_v8 = vpack.c.bf16 %v266_v7, %v266_v7 }
 0x10d   : > { %v432_v9 = vpop.f32.mrf.mxu0 }
 0x10e   : > { %280 = vst.msk [vmem:[%s198_s19 + $0x4] sm:$0xf] %vm278_vm2, %v420_v8 }
 0x10f   : > { %582 = shalt.err (!%p579_p5)
}
 0x110   : > { %s583_s3 = scalar_lea.hbm %s819_s26, 128  ;;  %s587_s7 = scalar_lea.hbm %s869_s2, 256 }
 0x111   : > { %p584_p7 = scmp.ne.s32.totalorder %s819_s26, %s583_s3  ;;  %p588_p9 = scmp.lt.s32.totalorder %s819_s26, %s869_s2 }
 0x112   : > { %p589_p11 = scmp.lt.s32.totalorder %s587_s7, %s583_s3 }
 0x113   : > { %p585_p4 = pnand %p584_p7, %p769_p13 }
 0x114   : > { %p590_p10 = por %p589_p11, %p588_p9 }
 0x115   : > { %p586_p6 = pneg %p585_p4 }
 0x117   : > { %p591_p1 = pnand %p590_p10, %p586_p6 }
 0x119   : > { %594 = shalt.err (!%p591_p1)
}
 0x11a   : > { %s662_s17 = smov 64   ;;  %s663_s19 = smov 4  }
 0x11b   : > { %439 = dma.vmem_to_hbm [thread:$0]  (%p769_p13), %s814_s21, 128, %s819_s26, %s282_s29, %s662_s17, %s662_s17, %s663_s19  }
 0x11c PF: > { %s312_s28 = sand.u32 1, %s633_s9   ;;  %p883_p8 = scmp.ne.s32.totalorder %s875_s20, 0 }
 0x11d   : > { %p884_p12 = scmp.ge.s32.totalorder %s653_s14, 2  ;;  %s313_s23 = scalar_lea.sflag [#allocation4], %s312_s28 }
 0x11f   : > { %p450_p0 = pnand %p884_p12, %p883_p8 }
 0x121   : > { %p451_p2 = pneg %p450_p0 }
 0x123   : > { %628 = dma.done.wait (%p451_p2), %s313_s23, 128  }
 0x124   : > { %630 = vsyncadd (%p451_p2), %s313_s23, 4294967168  ;;  %s19_s14 = sadd.s32 1, %s653_s14   ;;  %s885_s9 = smov %s637_s10 }
 0x125   : > { %p16_p3 = scmp.ge.s32.totalorder %s19_s14, 4   ;;  %s886_s10 = smov %s641_s11 }
 0x126   : > { %s887_s11 = smov %s778_s15  ;;  %s888_s12 = smov %s649_s13 }
 0x127   : > { %s889_s13 = smov %s891_s25  ;;  %18 = sbr.rel (!%p16_p3) target bundleno = 7 (0x7), region = 79 }
 0x12c   :  { %318 = vsyncpa [#allocation3], 1 }
 0x12d   :  { %320 = vsyncpa [#allocation3 + $0x1], 1 }
 0x12e   :  { %321 = vsyncpa [#allocation6], 1 }
 0x12f   :  { %323 = vsyncpa [#allocation6 + $0x1], 1 }
 0x130   :  { %324 = vsyncpa [#allocation4], 1 }
 0x131   :  { %326 = vsyncpa [#allocation4 + $0x1], 1 }

</bundles_post_ra>
